<compile_context>
chip_gen: v6e
topology: v6e:2x2x1
jax: 0.10.0
libtpu: 0.0.40
codegen_flags: <defaults>
</compile_context>

<pallas_src>
import functools

import jax
import jax.numpy as jnp
from jax.experimental import pallas as pl
from jax.experimental.pallas import tpu as pltpu


def _round_up(x, m):
    return ((x + m - 1) // m) * m


def _device_kind():
    try:
        return jax.devices()[0].device_kind.lower()
    except Exception:
        return ""


def _vmem_capacity_bytes():
    try:
        return int(pltpu.get_tpu_info().vmem_capacity_bytes)
    except Exception:
        return 128 << 20


# --------------------------------------------------------------------------
# Pallas kernel: fused MLP feature extractor + (fused, padded) predictor + softmax
# --------------------------------------------------------------------------
def box_head_kernel(feat_ref, w6_ref, b6_ref, w7_ref, b7_ref, wp_ref, bp_ref,
                    x_ref, logits_ref, boxreg_ref, scores_ref):
    n_cls_pad = logits_ref.shape[-1]          # static, multiple of 128

    feat = feat_ref[...]                      # [TILE_R, K_pad] bf16

    # fc6 + ReLU (f32 accumulation on the MXU)
    h6 = jnp.dot(feat, w6_ref[...], preferred_element_type=jnp.float32)
    h6 = jnp.maximum(h6 + b6_ref[...], 0.0)

    # fc7 + ReLU  -> feature-extractor output `x`
    h7 = jnp.dot(h6.astype(jnp.bfloat16), w7_ref[...],
                 preferred_element_type=jnp.float32)
    h7 = jnp.maximum(h7 + b7_ref[...], 0.0)
    h7_bf = h7.astype(jnp.bfloat16)
    x_ref[...] = h7_bf                        # bf16 store: half the vst + writeback bytes

    # predictor: single fused matmul -> [TILE_R, n_cls_pad + n_box_pad]
    pred = jnp.dot(h7_bf, wp_ref[...], preferred_element_type=jnp.float32) + bp_ref[...]
    logits = pred[:, :n_cls_pad]              # 128-aligned slice
    boxreg = pred[:, n_cls_pad:]
    logits_ref[...] = logits
    boxreg_ref[...] = boxreg

    # post-processor hot path: softmax (padded cls columns carry -1e30 bias -> exp==0)
    m = jnp.max(logits, axis=-1, keepdims=True)
    e = jnp.exp(logits - m)
    denom = jnp.sum(e, axis=-1, keepdims=True)
    scores_ref[...] = e * pl.reciprocal(denom, approx=True)
    # TODO(synk): box decode + per-class NMS of the post_processor are data-dependent,
    # variable-length ops with no clean Pallas equivalent; not implemented here.


def run_box_head(feat_bf16, params, num_classes, *, tile_r=None,
                 single_buffer_weights=True):
    """feat_bf16: [R, K] bfloat16 (already flattened pooled features).
    Returns (x[bf16], class_logits, box_regression, scores)."""
    R, K = feat_bf16.shape
    rep = params["w7"].shape[1]
    rep_pad = _round_up(rep, 128)             # lane-dense x output even for small configs
    K_pad = _round_up(max(K, 128), 128)
    n_cls = num_classes
    n_box = 4 * num_classes
    n_cls_pad = _round_up(n_cls, 128)
    n_box_pad = _round_up(n_box, 128)
    n_pred = n_cls_pad + n_box_pad

    kind = _device_kind()
    vmem_cap = _vmem_capacity_bytes()
    two_cores = "v7" in kind                  # v7x: 2 TensorCores per chip
    if tile_r is None:
        tile_r = 128 if "v5" in kind else 256  # v6e/v7x MXU is 256-wide; v5e gains nothing
    tile_r = _round_up(max(16, min(tile_r, _round_up(R, 16))), 16)

    wbuf = 1 if single_buffer_weights else 2

    def footprint(tr):
        weights = (K_pad * rep_pad + rep_pad * rep_pad + rep_pad * n_pred) * 2 * wbuf
        biases = (2 * rep_pad + n_pred) * 4 * wbuf
        feats = 2 * tr * K_pad * 2                                   # double-buffered bf16 tile
        outs = 2 * tr * (rep_pad * 2 + (2 * n_cls_pad + n_box_pad) * 4)
        interm = tr * (2 * rep_pad + n_pred) * 4 + tr * (rep_pad + n_pred) * 2
        return weights + biases + feats + outs + interm

    budget = int(0.85 * vmem_cap)             # never exceed physical VMEM (64 MiB on v7x)
    while tile_r > 128 and footprint(tile_r) + (4 << 20) > budget:
        tile_r = _round_up(tile_r // 2, 16)   # halve tile_r rather than re-reading weights

    R_pad = _round_up(R, tile_r)
    n_tiles = R_pad // tile_r
    if two_cores and n_tiles > 1 and n_tiles % 2:
        n_tiles += 1                          # even split across the 2 TCs on v7x
        R_pad = n_tiles * tile_r

    feat = feat_bf16
    if K_pad != K:
        feat = jnp.pad(feat, ((0, 0), (0, K_pad - K)))
    if R_pad != R:
        feat = jnp.pad(feat, ((0, R_pad - R), (0, 0)))

    # Parameter prep: pad everything to 128-lane multiples, fuse predictor weights,
    # cast matmul operands to bf16 (biases stay f32).
    w6 = jnp.zeros((K_pad, rep_pad), jnp.float32).at[:K, :rep].set(
        params["w6"]).astype(jnp.bfloat16)
    w7 = jnp.zeros((rep_pad, rep_pad), jnp.float32).at[:rep, :rep].set(
        params["w7"]).astype(jnp.bfloat16)
    b6 = jnp.zeros((1, rep_pad), jnp.float32).at[:, :rep].set(params["b6"])
    b7 = jnp.zeros((1, rep_pad), jnp.float32).at[:, :rep].set(params["b7"])
    wc_pad = jnp.zeros((rep_pad, n_cls_pad), jnp.float32).at[:rep, :n_cls].set(params["wc"])
    bc_pad = jnp.full((1, n_cls_pad), -1e30, jnp.float32).at[:, :n_cls].set(params["bc"])
    wb_pad = jnp.zeros((rep_pad, n_box_pad), jnp.float32).at[:rep, :n_box].set(params["wb"])
    bb_pad = jnp.zeros((1, n_box_pad), jnp.float32).at[:, :n_box].set(params["bb"])
    wp = jnp.concatenate([wc_pad, wb_pad], axis=1).astype(jnp.bfloat16)
    bp = jnp.concatenate([bc_pad, bb_pad], axis=1)

    roi_spec = lambda shape: pl.BlockSpec(shape, lambda i: (i, 0))
    if single_buffer_weights:
        # Resident operands: single-buffered -> no dead 2x VMEM copy of the fc6 weight.
        wgt_spec = lambda shape: pl.BlockSpec(shape, lambda i: (0, 0),
                                              pipeline_mode=pl.Buffered(1))
    else:
        wgt_spec = lambda shape: pl.BlockSpec(shape, lambda i: (0, 0))

    in_specs = [
        roi_spec((tile_r, K_pad)),        # pooled features (per-ROI tile, double-buffered)
        wgt_spec((K_pad, rep_pad)),       # w6 (resident)
        wgt_spec((1, rep_pad)),           # b6
        wgt_spec((rep_pad, rep_pad)),     # w7
        wgt_spec((1, rep_pad)),           # b7
        wgt_spec((rep_pad, n_pred)),      # fused predictor weight
        wgt_spec((1, n_pred)),            # fused predictor bias
    ]
    out_specs = (
        roi_spec((tile_r, rep_pad)),
        roi_spec((tile_r, n_cls_pad)),
        roi_spec((tile_r, n_box_pad)),
        roi_spec((tile_r, n_cls_pad)),
    )
    out_shapes = (
        jax.ShapeDtypeStruct((R_pad, rep_pad), jnp.bfloat16),    # x (bf16 store)
        jax.ShapeDtypeStruct((R_pad, n_cls_pad), jnp.float32),   # class logits (padded)
        jax.ShapeDtypeStruct((R_pad, n_box_pad), jnp.float32),   # box regression (padded)
        jax.ShapeDtypeStruct((R_pad, n_cls_pad), jnp.float32),   # softmax scores (padded)
    )

    vmem_limit = int(min(budget, max(32 << 20, footprint(tile_r) + (4 << 20))))

    flops = 2 * R_pad * (K_pad * rep_pad + rep_pad * rep_pad + rep_pad * n_pred)
    bytes_accessed = (
        R_pad * K_pad * 2
        + (K_pad * rep_pad + rep_pad * rep_pad + rep_pad * n_pred) * 2
        + (2 * rep_pad + n_pred) * 4
        + R_pad * (rep_pad * 2 + (2 * n_cls_pad + n_box_pad) * 4)
    )

    x, logits, boxreg, scores = pl.pallas_call(
        box_head_kernel,
        out_shape=out_shapes,
        grid_spec=pltpu.PrefetchScalarGridSpec(
            num_scalar_prefetch=0,
            grid=(n_tiles,),
            in_specs=in_specs,
            out_specs=out_specs,
        ),
        compiler_params=pltpu.CompilerParams(
            dimension_semantics=("parallel",),
            vmem_limit_bytes=vmem_limit,
        ),
        cost_estimate=pl.CostEstimate(
            flops=flops,
            transcendentals=R_pad * n_cls_pad,
            bytes_accessed=bytes_accessed,
        ),
    )(feat, w6, b6, w7, b7, wp, bp)

    # Strip ROI padding and lane padding in the wrapper.
    return (x[:R, :rep],
            logits[:R, :n_cls],
            boxreg[:R, :n_box],
            scores[:R, :n_cls])


# --------------------------------------------------------------------------
# ROIAlign pooler: separable bilinear weights -> matmuls (no scalarized gathers)
# --------------------------------------------------------------------------
def _interp_matrix(start, bin_size, pooled, sr, size):
    """[pooled*sr, size] bilinear sampling weights along one axis.
    Matches maskrcnn_benchmark ROIAlign: samples with coord < -1 or > size get zero."""
    p = jnp.arange(pooled, dtype=jnp.float32)
    g = (jnp.arange(sr, dtype=jnp.float32) + 0.5) / sr
    coord = (start + (p[:, None] + g[None, :]) * bin_size).reshape(-1)      # [S]
    valid = ((coord >= -1.0) & (coord <= size)).astype(jnp.float32)
    c = jnp.clip(coord, 0.0, size - 1.0)
    lo = jnp.minimum(jnp.floor(c).astype(jnp.int32), size - 1)
    hi = jnp.minimum(lo + 1, size - 1)
    frac = c - lo.astype(jnp.float32)
    idx = jnp.arange(size, dtype=jnp.int32)
    oh_lo = (lo[:, None] == idx[None, :]).astype(jnp.float32)               # [S, size]
    oh_hi = (hi[:, None] == idx[None, :]).astype(jnp.float32)
    w = (1.0 - frac)[:, None] * oh_lo + frac[:, None] * oh_hi
    return w * valid[:, None]


def roi_align(features, boxes, batch_idx, pooled_size, spatial_scale,
              sampling_ratio=2):
    """features: [N, C, H, W]; boxes: [R, 4] (x1,y1,x2,y2) image coords;
    batch_idx: [R] int32.
    Returns (pooled [R, C, P, P] f32, flat_bf16 [R, C*P*P] bf16)."""
    N, C, H, W = features.shape
    P = pooled_size
    sr = sampling_ratio

    def pool_one(box, bidx):
        fm = jnp.take(features, bidx, axis=0)              # [C, H, W]
        s = box * spatial_scale
        x1, y1, x2, y2 = s[0], s[1], s[2], s[3]
        roi_w = jnp.maximum(x2 - x1, 1.0)
        roi_h = jnp.maximum(y2 - y1, 1.0)
        wy = _interp_matrix(y1, roi_h / P, P, sr, H)       # [P*sr, H]
        wx = _interp_matrix(x1, roi_w / P, P, sr, W)       # [P*sr, W]
        tmp = jnp.einsum("sh,chw->csw", wy, fm)
        smp = jnp.einsum("csw,tw->cst", tmp, wx)           # [C, P*sr, P*sr]
        pooled = smp.reshape(C, P, sr, P, sr).mean(axis=(2, 4))
        # bf16 cast + flatten fused into the pooler epilogue: removes the separate
        # full read+write XLA pass over the [R, K] tensor before the box-head kernel.
        return pooled, pooled.reshape(-1).astype(jnp.bfloat16)

    # TODO(synk): at production shapes this should be windowed (dynamic_slice of a
    # per-ROI feature window) or fused into a Pallas kernel with scalar-prefetched box
    # coords and per-ROI DMA of the feature window; kept as dense separable matmuls
    # here, which avoid the scalarized-gather path on TPU and are fine at demo scale.
    pooled, flat_bf16 = jax.vmap(pool_one)(boxes, batch_idx)
    return pooled, flat_bf16


# --------------------------------------------------------------------------
# ROIBoxHead forward (inference-style)
# --------------------------------------------------------------------------
def roi_box_head_forward(features, boxes, batch_idx, params, *,
                         pooled_size, spatial_scale, num_classes,
                         single_buffer_weights=True):
    roi_align_features, pooled_flat_bf16 = roi_align(
        features, boxes, batch_idx, pooled_size, spatial_scale)
    x, class_logits, box_regression, scores = run_box_head(
        pooled_flat_bf16, params, num_classes,
        single_buffer_weights=single_buffer_weights)
    # NOTE: assumes bbox_pred columns are class-major [cls0:(dx,dy,dw,dh), cls1:...],
    # matching transposed nn.Linear weight export order.
    box_regression_per_class = box_regression.reshape(-1, num_classes, 4)
    return x, scores, class_logits, box_regression_per_class, roi_align_features


# --------------------------------------------------------------------------
# Deterministic parameter init (shapes implied by FPN2MLP extractor + predictor)
# --------------------------------------------------------------------------
def init_params(key, in_dim, rep_size, num_classes):
    ks = jax.random.split(key, 4)
    scale = 0.02
    return {
        "w6": scale * jax.random.normal(ks[0], (in_dim, rep_size), jnp.float32),
        "b6": jnp.zeros((1, rep_size), jnp.float32),
        "w7": scale * jax.random.normal(ks[1], (rep_size, rep_size), jnp.float32),
        "b7": jnp.zeros((1, rep_size), jnp.float32),
        "wc": scale * jax.random.normal(ks[2], (rep_size, num_classes), jnp.float32),
        "bc": jnp.zeros((1, num_classes), jnp.float32),
        "wb": scale * jax.random.normal(ks[3], (rep_size, num_classes * 4), jnp.float32),
        "bb": jnp.zeros((1, num_classes * 4), jnp.float32),
    }


if __name__ == "__main__":
    key = jax.random.PRNGKey(0)

    # Small config
    N, C, H, W = 2, 4, 16, 16          # feature map (single FPN level), NCHW
    P = 4                               # pooled resolution
    rep_size = 32                       # MLP representation size
    num_classes = 5
    rois_per_image = 8
    spatial_scale = 0.25                # feature stride 4 -> image is 64x64
    img_size = 64.0

    k_feat, k_box, k_param = jax.random.split(key, 3)
    features = jax.random.normal(k_feat, (N, C, H, W), jnp.float32)

    # Proposals: random boxes (x1,y1,x2,y2) in image coordinates
    pts = jax.random.uniform(k_box, (N * rois_per_image, 4), jnp.float32,
                             minval=0.0, maxval=img_size)
    x1 = jnp.minimum(pts[:, 0], pts[:, 2])
    x2 = jnp.maximum(pts[:, 0], pts[:, 2]) + 1.0
    y1 = jnp.minimum(pts[:, 1], pts[:, 3])
    y2 = jnp.maximum(pts[:, 1], pts[:, 3]) + 1.0
    boxes = jnp.stack([x1, y1, x2, y2], axis=1)
    batch_idx = jnp.repeat(jnp.arange(N, dtype=jnp.int32), rois_per_image)

    params = init_params(k_param, C * P * P, rep_size, num_classes)

    def make_fwd(single_buffer_weights):
        return jax.jit(functools.partial(
            roi_box_head_forward,
            pooled_size=P, spatial_scale=spatial_scale, num_classes=num_classes,
            single_buffer_weights=single_buffer_weights))

    try:
        out = make_fwd(True)(features, boxes, batch_idx, params)
        jax.block_until_ready(out)
    except Exception:
        # Conservative fallback if single-buffered (Buffered(1)) weight specs are
        # rejected by this Pallas/Mosaic version: default double-buffering.
        out = make_fwd(False)(features, boxes, batch_idx, params)
        jax.block_until_ready(out)

    x, scores, class_logits, box_reg, roi_feats = out

    R = N * rois_per_image
    assert x.shape == (R, rep_size)
    assert class_logits.shape == (R, num_classes)
    assert box_reg.shape == (R, num_classes, 4)
    assert scores.shape == (R, num_classes)
    assert roi_feats.shape == (R, C, P, P)
    assert bool(jnp.all(jnp.isfinite(scores)))
    assert bool(jnp.allclose(jnp.sum(scores, axis=-1), 1.0, atol=1e-3))
    print("KERNEL_OK")
</pallas_src>

<mosaic_0001>
module attributes {stable_mosaic.version = 11 : i64} {
  func.func @box_head_kernel(%arg0: i32, %arg1: memref<16x128xbf16, #tpu.memory_space<vmem>>, %arg2: memref<128x128xbf16, #tpu.memory_space<vmem>>, %arg3: memref<1x128xf32, #tpu.memory_space<vmem>>, %arg4: memref<128x128xbf16, #tpu.memory_space<vmem>>, %arg5: memref<1x128xf32, #tpu.memory_space<vmem>>, %arg6: memref<128x256xbf16, #tpu.memory_space<vmem>>, %arg7: memref<1x256xf32, #tpu.memory_space<vmem>>, %arg8: memref<16x128xbf16, #tpu.memory_space<vmem>>, %arg9: memref<16x128xf32, #tpu.memory_space<vmem>>, %arg10: memref<16x128xf32, #tpu.memory_space<vmem>>, %arg11: memref<16x128xf32, #tpu.memory_space<vmem>>) attributes {dimension_semantics = [#tpu.dimension_semantics<parallel>], iteration_bounds = array<i64: 1>, scalar_prefetch = 0 : i64, scratch_operands = 0 : i64, tpu.core_type = #tpu.core_type<tc>, window_params = [{transform_indices = @transform_0, window_bounds = array<i64: 16, 128>}, {pipeline_mode = #tpu.pipeline_mode<synchronous>, transform_indices = @transform_1, window_bounds = array<i64: 128, 128>}, {pipeline_mode = #tpu.pipeline_mode<synchronous>, transform_indices = @transform_2, window_bounds = array<i64: 1, 128>}, {pipeline_mode = #tpu.pipeline_mode<synchronous>, transform_indices = @transform_3, window_bounds = array<i64: 128, 128>}, {pipeline_mode = #tpu.pipeline_mode<synchronous>, transform_indices = @transform_4, window_bounds = array<i64: 1, 128>}, {pipeline_mode = #tpu.pipeline_mode<synchronous>, transform_indices = @transform_5, window_bounds = array<i64: 128, 256>}, {pipeline_mode = #tpu.pipeline_mode<synchronous>, transform_indices = @transform_6, window_bounds = array<i64: 1, 256>}, {transform_indices = @transform_7, window_bounds = array<i64: 16, 128>}, {transform_indices = @transform_8, window_bounds = array<i64: 16, 128>}, {transform_indices = @transform_9, window_bounds = array<i64: 16, 128>}, {transform_indices = @transform_10, window_bounds = array<i64: 16, 128>}]} {
    %c0 = arith.constant 0 : index
    %c0_0 = arith.constant 0 : index
    %0 = vector.load %arg1[%c0, %c0_0] : memref<16x128xbf16, #tpu.memory_space<vmem>>, vector<16x128xbf16>
    %c0_1 = arith.constant 0 : index
    %c0_2 = arith.constant 0 : index
    %1 = vector.load %arg2[%c0_1, %c0_2] : memref<128x128xbf16, #tpu.memory_space<vmem>>, vector<128x128xbf16>
    %cst = arith.constant dense<0.000000e+00> : vector<16x128xf32>
    %2 = tpu.matmul %0, %1, %cst {dimension_numbers = #tpu.dot_dimension_numbers<[1], [0], [0], [1], [0, 0, 1, 1], [], []>} : vector<16x128xbf16>, vector<128x128xbf16>, vector<16x128xf32> -> vector<16x128xf32>
    %c0_3 = arith.constant 0 : index
    %c0_4 = arith.constant 0 : index
    %3 = vector.load %arg3[%c0_3, %c0_4] : memref<1x128xf32, #tpu.memory_space<vmem>>, vector<1x128xf32>
    %4 = vector.broadcast %3 : vector<1x128xf32> to vector<16x128xf32>
    %5 = arith.addf %2, %4 : vector<16x128xf32>
    %cst_5 = arith.constant 0.000000e+00 : f32
    %6 = vector.broadcast %cst_5 : f32 to vector<16x128xf32>
    %7 = arith.maximumf %5, %6 : vector<16x128xf32>
    %8 = arith.truncf %7 : vector<16x128xf32> to vector<16x128xbf16>
    %c0_6 = arith.constant 0 : index
    %c0_7 = arith.constant 0 : index
    %9 = vector.load %arg4[%c0_6, %c0_7] : memref<128x128xbf16, #tpu.memory_space<vmem>>, vector<128x128xbf16>
    %cst_8 = arith.constant dense<0.000000e+00> : vector<16x128xf32>
    %10 = tpu.matmul %8, %9, %cst_8 {dimension_numbers = #tpu.dot_dimension_numbers<[1], [0], [0], [1], [0, 0, 1, 1], [], []>} : vector<16x128xbf16>, vector<128x128xbf16>, vector<16x128xf32> -> vector<16x128xf32>
    %c0_9 = arith.constant 0 : index
    %c0_10 = arith.constant 0 : index
    %11 = vector.load %arg5[%c0_9, %c0_10] : memref<1x128xf32, #tpu.memory_space<vmem>>, vector<1x128xf32>
    %12 = vector.broadcast %11 : vector<1x128xf32> to vector<16x128xf32>
    %13 = arith.addf %10, %12 : vector<16x128xf32>
    %cst_11 = arith.constant 0.000000e+00 : f32
    %14 = vector.broadcast %cst_11 : f32 to vector<16x128xf32>
    %15 = arith.maximumf %13, %14 : vector<16x128xf32>
    %16 = arith.truncf %15 : vector<16x128xf32> to vector<16x128xbf16>
    %c0_12 = arith.constant 0 : index
    %c0_13 = arith.constant 0 : index
    %17 = vector.load %arg8[%c0_12, %c0_13] : memref<16x128xbf16, #tpu.memory_space<vmem>>, vector<16x128xbf16>
    tpu.vector_store %arg8[%c0_12, %c0_13], %16 {strides = array<i32>} : memref<16x128xbf16, #tpu.memory_space<vmem>>, vector<16x128xbf16>,
    %c0_14 = arith.constant 0 : index
    %c0_15 = arith.constant 0 : index
    %18 = vector.load %arg6[%c0_14, %c0_15] : memref<128x256xbf16, #tpu.memory_space<vmem>>, vector<128x256xbf16>
    %cst_16 = arith.constant dense<0.000000e+00> : vector<16x256xf32>
    %19 = tpu.matmul %16, %18, %cst_16 {dimension_numbers = #tpu.dot_dimension_numbers<[1], [0], [0], [1], [0, 0, 1, 1], [], []>} : vector<16x128xbf16>, vector<128x256xbf16>, vector<16x256xf32> -> vector<16x256xf32>
    %c0_17 = arith.constant 0 : index
    %c0_18 = arith.constant 0 : index
    %20 = vector.load %arg7[%c0_17, %c0_18] : memref<1x256xf32, #tpu.memory_space<vmem>>, vector<1x256xf32>
    %21 = vector.broadcast %20 : vector<1x256xf32> to vector<16x256xf32>
    %22 = arith.addf %19, %21 : vector<16x256xf32>
    %23 = vector.extract_strided_slice %22 {offsets = [0, 0], sizes = [16, 128], strides = [1, 1]} : vector<16x256xf32> to vector<16x128xf32>
    %24 = vector.extract_strided_slice %22 {offsets = [0, 128], sizes = [16, 128], strides = [1, 1]} : vector<16x256xf32> to vector<16x128xf32>
    %c0_19 = arith.constant 0 : index
    %c0_20 = arith.constant 0 : index
    %25 = vector.load %arg9[%c0_19, %c0_20] : memref<16x128xf32, #tpu.memory_space<vmem>>, vector<16x128xf32>
    tpu.vector_store %arg9[%c0_19, %c0_20], %23 {strides = array<i32>} : memref<16x128xf32, #tpu.memory_space<vmem>>, vector<16x128xf32>,
    %c0_21 = arith.constant 0 : index
    %c0_22 = arith.constant 0 : index
    %26 = vector.load %arg10[%c0_21, %c0_22] : memref<16x128xf32, #tpu.memory_space<vmem>>, vector<16x128xf32>
    tpu.vector_store %arg10[%c0_21, %c0_22], %24 {strides = array<i32>} : memref<16x128xf32, #tpu.memory_space<vmem>>, vector<16x128xf32>,
    %cst_23 = arith.constant dense<0xFF800000> : vector<16xf32>
    %27 = vector.multi_reduction <maximumf>, %23, %cst_23 [1] : vector<16x128xf32> to vector<16xf32>
    %28 = vector.shape_cast %27 : vector<16xf32> to vector<16x1xf32>
    %29 = vector.broadcast %28 : vector<16x1xf32> to vector<16x128xf32>
    %30 = arith.subf %23, %29 : vector<16x128xf32>
    %31 = math.exp %30 : vector<16x128xf32>
    %cst_24 = arith.constant dense<0.000000e+00> : vector<16xf32>
    %32 = vector.multi_reduction <add>, %31, %cst_24 [1] : vector<16x128xf32> to vector<16xf32>
    %33 = vector.shape_cast %32 : vector<16xf32> to vector<16x1xf32>
    %34 = tpu.reciprocal %33 {approx = true} : vector<16x1xf32> -> vector<16x1xf32>
    %35 = vector.broadcast %34 : vector<16x1xf32> to vector<16x128xf32>
    %36 = arith.mulf %31, %35 : vector<16x128xf32>
    %c0_25 = arith.constant 0 : index
    %c0_26 = arith.constant 0 : index
    %37 = vector.load %arg11[%c0_25, %c0_26] : memref<16x128xf32, #tpu.memory_space<vmem>>, vector<16x128xf32>
    tpu.vector_store %arg11[%c0_25, %c0_26], %36 {strides = array<i32>} : memref<16x128xf32, #tpu.memory_space<vmem>>, vector<16x128xf32>,
    return
  }
  func.func @transform_0(%arg0: i32) -> (i32, i32) {
    %c0_i32 = arith.constant 0 : i32
    %c0_i32_0 = arith.constant 0 : i32
    return %arg0, %c0_i32 : i32, i32
  }
  func.func @transform_1(%arg0: i32) -> (i32, i32) {
    %c0_i32 = arith.constant 0 : i32
    %c0_i32_0 = arith.constant 0 : i32
    %c0_i32_1 = arith.constant 0 : i32
    return %c0_i32, %c0_i32_0 : i32, i32
  }
  func.func @transform_2(%arg0: i32) -> (i32, i32) {
    %c0_i32 = arith.constant 0 : i32
    %c0_i32_0 = arith.constant 0 : i32
    %c0_i32_1 = arith.constant 0 : i32
    return %c0_i32, %c0_i32_0 : i32, i32
  }
  func.func @transform_3(%arg0: i32) -> (i32, i32) {
    %c0_i32 = arith.constant 0 : i32
    %c0_i32_0 = arith.constant 0 : i32
    %c0_i32_1 = arith.constant 0 : i32
    return %c0_i32, %c0_i32_0 : i32, i32
  }
  func.func @transform_4(%arg0: i32) -> (i32, i32) {
    %c0_i32 = arith.constant 0 : i32
    %c0_i32_0 = arith.constant 0 : i32
    %c0_i32_1 = arith.constant 0 : i32
    return %c0_i32, %c0_i32_0 : i32, i32
  }
  func.func @transform_5(%arg0: i32) -> (i32, i32) {
    %c0_i32 = arith.constant 0 : i32
    %c0_i32_0 = arith.constant 0 : i32
    %c0_i32_1 = arith.constant 0 : i32
    return %c0_i32, %c0_i32_0 : i32, i32
  }
  func.func @transform_6(%arg0: i32) -> (i32, i32) {
    %c0_i32 = arith.constant 0 : i32
    %c0_i32_0 = arith.constant 0 : i32
    %c0_i32_1 = arith.constant 0 : i32
    return %c0_i32, %c0_i32_0 : i32, i32
  }
  func.func @transform_7(%arg0: i32) -> (i32, i32) {
    %c0_i32 = arith.constant 0 : i32
    %c0_i32_0 = arith.constant 0 : i32
    return %arg0, %c0_i32 : i32, i32
  }
  func.func @transform_8(%arg0: i32) -> (i32, i32) {
    %c0_i32 = arith.constant 0 : i32
    %c0_i32_0 = arith.constant 0 : i32
    return %arg0, %c0_i32 : i32, i32
  }
  func.func @transform_9(%arg0: i32) -> (i32, i32) {
    %c0_i32 = arith.constant 0 : i32
    %c0_i32_0 = arith.constant 0 : i32
    return %arg0, %c0_i32 : i32, i32
  }
  func.func @transform_10(%arg0: i32) -> (i32, i32) {
    %c0_i32 = arith.constant 0 : i32
    %c0_i32_0 = arith.constant 0 : i32
    return %arg0, %c0_i32 : i32, i32
  }
}

module attributes {stable_mosaic.version = 11 : i64} {
  func.func @box_head_kernel(%arg0: i32, %arg1: memref<16x128xbf16, #tpu.memory_space<vmem>>, %arg2: memref<128x128xbf16, #tpu.memory_space<vmem>>, %arg3: memref<1x128xf32, #tpu.memory_space<vmem>>, %arg4: memref<128x128xbf16, #tpu.memory_space<vmem>>, %arg5: memref<1x128xf32, #tpu.memory_space<vmem>>, %arg6: memref<128x256xbf16, #tpu.memory_space<vmem>>, %arg7: memref<1x256xf32, #tpu.memory_space<vmem>>, %arg8: memref<16x128xbf16, #tpu.memory_space<vmem>>, %arg9: memref<16x128xf32, #tpu.memory_space<vmem>>, %arg10: memref<16x128xf32, #tpu.memory_space<vmem>>, %arg11: memref<16x128xf32, #tpu.memory_space<vmem>>) attributes {dimension_semantics = [#tpu.dimension_semantics<parallel>], iteration_bounds = array<i64: 1>, scalar_prefetch = 0 : i64, scratch_operands = 0 : i64, tpu.core_type = #tpu.core_type<tc>, window_params = [{transform_indices = @transform_0, window_bounds = array<i64: 16, 128>}, {pipeline_mode = #tpu.pipeline_mode<synchronous>, transform_indices = @transform_1, window_bounds = array<i64: 128, 128>}, {pipeline_mode = #tpu.pipeline_mode<synchronous>, transform_indices = @transform_2, window_bounds = array<i64: 1, 128>}, {pipeline_mode = #tpu.pipeline_mode<synchronous>, transform_indices = @transform_3, window_bounds = array<i64: 128, 128>}, {pipeline_mode = #tpu.pipeline_mode<synchronous>, transform_indices = @transform_4, window_bounds = array<i64: 1, 128>}, {pipeline_mode = #tpu.pipeline_mode<synchronous>, transform_indices = @transform_5, window_bounds = array<i64: 128, 256>}, {pipeline_mode = #tpu.pipeline_mode<synchronous>, transform_indices = @transform_6, window_bounds = array<i64: 1, 256>}, {transform_indices = @transform_7, window_bounds = array<i64: 16, 128>}, {transform_indices = @transform_8, window_bounds = array<i64: 16, 128>}, {transform_indices = @transform_9, window_bounds = array<i64: 16, 128>}, {transform_indices = @transform_10, window_bounds = array<i64: 16, 128>}]} {
    %c0 = arith.constant 0 : index
    %c0_0 = arith.constant 0 : index
    %0 = vector.load %arg1[%c0, %c0_0] : memref<16x128xbf16, #tpu.memory_space<vmem>>, vector<16x128xbf16>
    %c0_1 = arith.constant 0 : index
    %c0_2 = arith.constant 0 : index
    %1 = vector.load %arg2[%c0_1, %c0_2] : memref<128x128xbf16, #tpu.memory_space<vmem>>, vector<128x128xbf16>
    %cst = arith.constant dense<0.000000e+00> : vector<16x128xf32>
    %2 = tpu.matmul %0, %1, %cst {dimension_numbers = #tpu.dot_dimension_numbers<[1], [0], [0], [1], [0, 0, 1, 1], [], []>} : vector<16x128xbf16>, vector<128x128xbf16>, vector<16x128xf32> -> vector<16x128xf32>
    %c0_3 = arith.constant 0 : index
    %c0_4 = arith.constant 0 : index
    %3 = vector.load %arg3[%c0_3, %c0_4] : memref<1x128xf32, #tpu.memory_space<vmem>>, vector<1x128xf32>
    %4 = vector.broadcast %3 : vector<1x128xf32> to vector<16x128xf32>
    %5 = arith.addf %2, %4 : vector<16x128xf32>
    %cst_5 = arith.constant 0.000000e+00 : f32
    %6 = vector.broadcast %cst_5 : f32 to vector<16x128xf32>
    %7 = arith.maximumf %5, %6 : vector<16x128xf32>
    %8 = arith.truncf %7 : vector<16x128xf32> to vector<16x128xbf16>
    %c0_6 = arith.constant 0 : index
    %c0_7 = arith.constant 0 : index
    %9 = vector.load %arg4[%c0_6, %c0_7] : memref<128x128xbf16, #tpu.memory_space<vmem>>, vector<128x128xbf16>
    %cst_8 = arith.constant dense<0.000000e+00> : vector<16x128xf32>
    %10 = tpu.matmul %8, %9, %cst_8 {dimension_numbers = #tpu.dot_dimension_numbers<[1], [0], [0], [1], [0, 0, 1, 1], [], []>} : vector<16x128xbf16>, vector<128x128xbf16>, vector<16x128xf32> -> vector<16x128xf32>
    %c0_9 = arith.constant 0 : index
    %c0_10 = arith.constant 0 : index
    %11 = vector.load %arg5[%c0_9, %c0_10] : memref<1x128xf32, #tpu.memory_space<vmem>>, vector<1x128xf32>
    %12 = vector.broadcast %11 : vector<1x128xf32> to vector<16x128xf32>
    %13 = arith.addf %10, %12 : vector<16x128xf32>
    %cst_11 = arith.constant 0.000000e+00 : f32
    %14 = vector.broadcast %cst_11 : f32 to vector<16x128xf32>
    %15 = arith.maximumf %13, %14 : vector<16x128xf32>
    %16 = arith.truncf %15 : vector<16x128xf32> to vector<16x128xbf16>
    %c0_12 = arith.constant 0 : index
    %c0_13 = arith.constant 0 : index
    %17 = vector.load %arg8[%c0_12, %c0_13] : memref<16x128xbf16, #tpu.memory_space<vmem>>, vector<16x128xbf16>
    tpu.vector_store %arg8[%c0_12, %c0_13], %16 {strides = array<i32>} : memref<16x128xbf16, #tpu.memory_space<vmem>>, vector<16x128xbf16>,
    %c0_14 = arith.constant 0 : index
    %c0_15 = arith.constant 0 : index
    %18 = vector.load %arg6[%c0_14, %c0_15] : memref<128x256xbf16, #tpu.memory_space<vmem>>, vector<128x256xbf16>
    %cst_16 = arith.constant dense<0.000000e+00> : vector<16x256xf32>
    %19 = tpu.matmul %16, %18, %cst_16 {dimension_numbers = #tpu.dot_dimension_numbers<[1], [0], [0], [1], [0, 0, 1, 1], [], []>} : vector<16x128xbf16>, vector<128x256xbf16>, vector<16x256xf32> -> vector<16x256xf32>
    %c0_17 = arith.constant 0 : index
    %c0_18 = arith.constant 0 : index
    %20 = vector.load %arg7[%c0_17, %c0_18] : memref<1x256xf32, #tpu.memory_space<vmem>>, vector<1x256xf32>
    %21 = vector.broadcast %20 : vector<1x256xf32> to vector<16x256xf32>
    %22 = arith.addf %19, %21 : vector<16x256xf32>
    %23 = vector.extract_strided_slice %22 {offsets = [0, 0], sizes = [16, 128], strides = [1, 1]} : vector<16x256xf32> to vector<16x128xf32>
    %24 = vector.extract_strided_slice %22 {offsets = [0, 128], sizes = [16, 128], strides = [1, 1]} : vector<16x256xf32> to vector<16x128xf32>
    %c0_19 = arith.constant 0 : index
    %c0_20 = arith.constant 0 : index
    %25 = vector.load %arg9[%c0_19, %c0_20] : memref<16x128xf32, #tpu.memory_space<vmem>>, vector<16x128xf32>
    tpu.vector_store %arg9[%c0_19, %c0_20], %23 {strides = array<i32>} : memref<16x128xf32, #tpu.memory_space<vmem>>, vector<16x128xf32>,
    %c0_21 = arith.constant 0 : index
    %c0_22 = arith.constant 0 : index
    %26 = vector.load %arg10[%c0_21, %c0_22] : memref<16x128xf32, #tpu.memory_space<vmem>>, vector<16x128xf32>
    tpu.vector_store %arg10[%c0_21, %c0_22], %24 {strides = array<i32>} : memref<16x128xf32, #tpu.memory_space<vmem>>, vector<16x128xf32>,
    %cst_23 = arith.constant dense<0xFF800000> : vector<16xf32>
    %27 = vector.multi_reduction <maximumf>, %23, %cst_23 [1] : vector<16x128xf32> to vector<16xf32>
    %28 = vector.shape_cast %27 : vector<16xf32> to vector<16x1xf32>
    %29 = vector.broadcast %28 : vector<16x1xf32> to vector<16x128xf32>
    %30 = arith.subf %23, %29 : vector<16x128xf32>
    %31 = math.exp %30 : vector<16x128xf32>
    %cst_24 = arith.constant dense<0.000000e+00> : vector<16xf32>
    %32 = vector.multi_reduction <add>, %31, %cst_24 [1] : vector<16x128xf32> to vector<16xf32>
    %33 = vector.shape_cast %32 : vector<16xf32> to vector<16x1xf32>
    %34 = tpu.reciprocal %33 {approx = true} : vector<16x1xf32> -> vector<16x1xf32>
    %35 = vector.broadcast %34 : vector<16x1xf32> to vector<16x128xf32>
    %36 = arith.mulf %31, %35 : vector<16x128xf32>
    %c0_25 = arith.constant 0 : index
    %c0_26 = arith.constant 0 : index
    %37 = vector.load %arg11[%c0_25, %c0_26] : memref<16x128xf32, #tpu.memory_space<vmem>>, vector<16x128xf32>
    tpu.vector_store %arg11[%c0_25, %c0_26], %36 {strides = array<i32>} : memref<16x128xf32, #tpu.memory_space<vmem>>, vector<16x128xf32>,
    return
  }
  func.func @transform_0(%arg0: i32) -> (i32, i32) {
    %c0_i32 = arith.constant 0 : i32
    %c0_i32_0 = arith.constant 0 : i32
    return %arg0, %c0_i32 : i32, i32
  }
  func.func @transform_1(%arg0: i32) -> (i32, i32) {
    %c0_i32 = arith.constant 0 : i32
    %c0_i32_0 = arith.constant 0 : i32
    %c0_i32_1 = arith.constant 0 : i32
    return %c0_i32, %c0_i32_0 : i32, i32
  }
  func.func @transform_2(%arg0: i32) -> (i32, i32) {
    %c0_i32 = arith.constant 0 : i32
    %c0_i32_0 = arith.constant 0 : i32
    %c0_i32_1 = arith.constant 0 : i32
    return %c0_i32, %c0_i32_0 : i32, i32
  }
  func.func @transform_3(%arg0: i32) -> (i32, i32) {
    %c0_i32 = arith.constant 0 : i32
    %c0_i32_0 = arith.constant 0 : i32
    %c0_i32_1 = arith.constant 0 : i32
    return %c0_i32, %c0_i32_0 : i32, i32
  }
  func.func @transform_4(%arg0: i32) -> (i32, i32) {
    %c0_i32 = arith.constant 0 : i32
    %c0_i32_0 = arith.constant 0 : i32
    %c0_i32_1 = arith.constant 0 : i32
    return %c0_i32, %c0_i32_0 : i32, i32
  }
  func.func @transform_5(%arg0: i32) -> (i32, i32) {
    %c0_i32 = arith.constant 0 : i32
    %c0_i32_0 = arith.constant 0 : i32
    %c0_i32_1 = arith.constant 0 : i32
    return %c0_i32, %c0_i32_0 : i32, i32
  }
  func.func @transform_6(%arg0: i32) -> (i32, i32) {
    %c0_i32 = arith.constant 0 : i32
    %c0_i32_0 = arith.constant 0 : i32
    %c0_i32_1 = arith.constant 0 : i32
    return %c0_i32, %c0_i32_0 : i32, i32
  }
  func.func @transform_7(%arg0: i32) -> (i32, i32) {
    %c0_i32 = arith.constant 0 : i32
    %c0_i32_0 = arith.constant 0 : i32
    return %arg0, %c0_i32 : i32, i32
  }
  func.func @transform_8(%arg0: i32) -> (i32, i32) {
    %c0_i32 = arith.constant 0 : i32
    %c0_i32_0 = arith.constant 0 : i32
    return %arg0, %c0_i32 : i32, i32
  }
  func.func @transform_9(%arg0: i32) -> (i32, i32) {
    %c0_i32 = arith.constant 0 : i32
    %c0_i32_0 = arith.constant 0 : i32
    return %arg0, %c0_i32 : i32, i32
  }
  func.func @transform_10(%arg0: i32) -> (i32, i32) {
    %c0_i32 = arith.constant 0 : i32
    %c0_i32_0 = arith.constant 0 : i32
    return %arg0, %c0_i32 : i32, i32
  }
}

</mosaic_0001>

<bundles_post_ra>
// kernel: roi_box_head_forward.1
= control target key start
LH: loop header
LB: loop body
LE: loop exit
PB: predicated region body
PF: predicated region fallthrough
CT: control target
= control target key end

     0   :  { %v661_v1 = vmov 0.0   ;;  %vm662_vm0 = vmmov 0   ;;  %s851_s0 = inlined_call_operand.vmem [shape: bf16[16,128], index: 0, kind: input, shape index: {}]   ;;  %s852_s1 = inlined_call_operand.vmem [shape: bf16[128,128], index: 1, kind: input, shape index: {}]   ;;  %s853_s2 = inlined_call_operand.vmem [shape: f32[1,128], index: 2, kind: input, shape index: {}]   ;;  %s854_s3 = inlined_call_operand.vmem [shape: bf16[128,128], index: 3, kind: input, shape index: {}]   ;;  %s855_s4 = inlined_call_operand.vmem [shape: f32[1,128], index: 4, kind: input, shape index: {}]   ;;  %s856_s5 = inlined_call_operand.vmem [shape: bf16[128,256], index: 5, kind: input, shape index: {}]   ;;  %s857_s6 = inlined_call_operand.vmem [shape: f32[1,256], index: 6, kind: input, shape index: {}]   ;;  %s858_s7 = inlined_call_operand.hbm [shape: bf16[16,128], index: 7, kind: output, shape index: {0}]   ;;  %s859_s8 = inlined_call_operand.vmem [shape: f32[16,128], index: 8, kind: output, shape index: {1}]   ;;  %s860_s9 = inlined_call_operand.vmem [shape: f32[16,128], index: 9, kind: output, shape index: {2}]   ;;  %s861_s10 = inlined_call_operand.vmem [shape: f32[16,128], index: 10, kind: output, shape index: {3}]  }
   0x1   :  { %v590_v0 = vld [vmem:[%s852_s1 + $0x38] sm:$0xff]   ;;  %544 = vmatprep.subr.bf16.mxu0 %v661_v1  ;;  %564 = vmatprep.subr.bf16.mxu1 %v661_v1  ;;  %v591_v2 = vld [vmem:[%s852_s1 + $0x30] sm:$0xff]   ;;  %v592_v3 = vld [vmem:[%s852_s1 + $0x28] sm:$0xff]  }
   0x2   :  { %545 = vmatpush3.bf16.msra.mxu0 %v590_v0  ;;  %560 = vmatprep.mubr.msk.bf16.mxu0 %vm662_vm0, %v661_v1  ;;  %v599_v4 = vld [vmem:[%s854_s3 + $0x38] sm:$0xff]   ;;  %v593_v5 = vld [vmem:[%s852_s1 + $0x20] sm:$0xff]   ;;  %v600_v6 = vld [vmem:[%s854_s3 + $0x30] sm:$0xff]  }
   0x3   :  { %546 = vmatprep.subr.bf16.mxu0 %v661_v1  ;;  %580 = vmatprep.mubr.msk.bf16.mxu1 %vm662_vm0, %v661_v1  ;;  %v594_v7 = vld [vmem:[%s852_s1 + $0x18] sm:$0xff]   ;;  %v601_v8 = vld [vmem:[%s854_s3 + $0x28] sm:$0xff]   ;;  %v595_v9 = vld [vmem:[%s852_s1 + $0x10] sm:$0xff]  }
   0x4   :  { %565 = vmatpush3.bf16.msra.mxu1 %v599_v4  ;;  %v602_v10 = vld [vmem:[%s854_s3 + $0x20] sm:$0xff]  }
   0x5   :  { %566 = vmatprep.subr.bf16.mxu1 %v661_v1 }
   0x6   :  { %547 = vmatpush3.bf16.msra.mxu0 %v591_v2 }
   0x7   :  { %548 = vmatprep.subr.bf16.mxu0 %v661_v1 }
   0x8   :  { %567 = vmatpush3.bf16.msra.mxu1 %v600_v6 }
   0x9   :  { %568 = vmatprep.subr.bf16.mxu1 %v661_v1 }
   0xa   :  { %549 = vmatpush3.bf16.msra.mxu0 %v592_v3 }
   0xb   :  { %550 = vmatprep.subr.bf16.mxu0 %v661_v1 }
   0xc   :  { %569 = vmatpush3.bf16.msra.mxu1 %v601_v8 }
   0xd   :  { %570 = vmatprep.subr.bf16.mxu1 %v661_v1 }
   0xe   :  { %551 = vmatpush3.bf16.msra.mxu0 %v593_v5 }
   0xf   :  { %552 = vmatprep.subr.bf16.mxu0 %v661_v1 }
  0x12   :  { %553 = vmatpush3.bf16.msra.mxu0 %v594_v7 }
  0x13   :  { %554 = vmatprep.subr.bf16.mxu0 %v661_v1 }
  0x14   :  { %16 = vsyncpa [#allocation3], 0  ;;  %v596_v11 = vld [vmem:[%s852_s1 + $0x8] sm:$0xff]   ;;  %571 = vmatpush3.bf16.msra.mxu1 %v602_v10  ;;  %v603_v12 = vld [vmem:[%s854_s3 + $0x18] sm:$0xff]   ;;  %v663_v44 = vmov 0   ;;  %v297_v55 = vlaneseq  ;;  %s664_s23 = smov [#allocation2]  }
  0x15   :  { %572 = vmatprep.subr.bf16.mxu1 %v661_v1  ;;  %v597_v13 = vld [vmem:[%s852_s1] sm:$0xff]   ;;  %v604_v15 = vld [vmem:[%s854_s3 + $0x10] sm:$0xff]   ;;  %v605_v16 = vld [vmem:[%s854_s3 + $0x8] sm:$0xff]  }
  0x16   :  { %555 = vmatpush3.bf16.msra.mxu0 %v595_v9  ;;  %v598_v14 = vld [vmem:[%s851_s0] sm:$0xff]   ;;  %v607_v18 = vld [vmem:[%s856_s5 + $0x70] ss:$8 sps:$4 sm:$0xff]   ;;  %v609_v19 = vld [vmem:[%s856_s5 + $0x74] ss:$8 sps:$4 sm:$0xff]   ;;  %v298_v56 = vshrl.u32 %v297_v55, 7 }
  0x17   :  { %556 = vmatprep.subr.bf16.mxu0 %v661_v1  ;;  %v606_v17 = vld [vmem:[%s854_s3] sm:$0xff]   ;;  %v615_v22 = vld [vmem:[%s856_s5 + $0x54] ss:$8 sps:$4 sm:$0xff]   ;;  %v613_v23 = vld [vmem:[%s856_s5 + $0x50] ss:$8 sps:$4 sm:$0xff]  }
  0x18   :  { %573 = vmatpush3.bf16.msra.mxu1 %v603_v12  ;;  %v612_v20 = vld [vmem:[%s856_s5 + $0x64] ss:$8 sps:$4 sm:$0xff]   ;;  %v610_v21 = vld [vmem:[%s856_s5 + $0x60] ss:$8 sps:$4 sm:$0xff]   ;;  %v621_v26 = vld [vmem:[%s856_s5 + $0x34] ss:$8 sps:$4 sm:$0xff]  }
  0x19   :  { %574 = vmatprep.subr.bf16.mxu1 %v661_v1  ;;  %v618_v24 = vld [vmem:[%s856_s5 + $0x44] ss:$8 sps:$4 sm:$0xff]   ;;  %v616_v25 = vld [vmem:[%s856_s5 + $0x40] ss:$8 sps:$4 sm:$0xff]   ;;  %v619_v27 = vld [vmem:[%s856_s5 + $0x30] ss:$8 sps:$4 sm:$0xff]  }
  0x1a   :  { %557 = vmatpush3.bf16.msra.mxu0 %v596_v11  ;;  %v624_v28 = vld [vmem:[%s856_s5 + $0x24] ss:$8 sps:$4 sm:$0xff]   ;;  %v622_v29 = vld [vmem:[%s856_s5 + $0x20] ss:$8 sps:$4 sm:$0xff]   ;;  %v627_v40 = vld [vmem:[%s856_s5 + $0x14] ss:$8 sps:$4 sm:$0xff]  }
  0x1b   :  { %558 = vmatprep.subr.bf16.mxu0 %v661_v1  ;;  %v482_v30 = vld [vmem:[%s853_s2] ss:$0 sm:$0xff]  ;;  %v625_v41 = vld [vmem:[%s856_s5 + $0x10] ss:$8 sps:$4 sm:$0xff]   ;;  %v630_v42 = vld [vmem:[%s856_s5 + $0x4] ss:$8 sps:$4 sm:$0xff]  }
  0x1c   :  { %575 = vmatpush3.bf16.msra.mxu1 %v604_v15  ;;  %v628_v43 = vld [vmem:[%s856_s5] ss:$8 sps:$4 sm:$0xff]   ;;  %v299_v57 = vsub.s32 0, %v298_v56  ;;  %v303_v59 = vsub.s32 1, %v298_v56 }
  0x1d   :  { %576 = vmatprep.subr.bf16.mxu1 %v661_v1  ;;  %v492_v45 = vld [vmem:[%s855_s4] ss:$0 sm:$0xff] }
  0x1e   :  { %559 = vmatpush3.bf16.msra.mxu0 %v597_v13  ;;  %v295_v58 = vld [vmem:[%s857_s6] sm:$0x3] }
  0x1f   :  { %387 = vmatprep.subr.bf16.mxu0 %v609_v19  ;;  %v300_v60 = vrot.slane %v295_v58, %v299_v57  ;;  %v304_v61 = vrot.slane %v295_v58, %v303_v59 }
  0x20   :  { %577 = vmatpush3.bf16.msra.mxu1 %v605_v16 }
  0x21   :  { %561 = vmatmul.mubr.bf16.vlgmr.msra.gmra.mxu0 %v598_v14  ;;  %578 = vmatprep.subr.bf16.mxu1 %v661_v1 }
  0x22   :  { %388 = vmatpush1.bf16.msra.mxu0 %v607_v18  ;;  %419 = vmatprep.mubr.bf16.mxu0 %v663_v44 }
  0x23   :  { %389 = vmatprep.subr.bf16.mxu0 %v612_v20 }
  0x24   :  { %579 = vmatpush3.bf16.msra.mxu1 %v606_v17 }
  0x26   :  { %390 = vmatpush1.bf16.msra.mxu0 %v610_v21 }
  0x27   :  { %391 = vmatprep.subr.bf16.mxu0 %v615_v22 }
  0x2a   :  { %392 = vmatpush1.bf16.msra.mxu0 %v613_v23 }
  0x2b   :  { %393 = vmatprep.subr.bf16.mxu0 %v618_v24 }
  0x2e   :  { %394 = vmatpush1.bf16.msra.mxu0 %v616_v25 }
  0x2f   :  { %395 = vmatprep.subr.bf16.mxu0 %v621_v26 }
  0x32   :  { %396 = vmatpush1.bf16.msra.mxu0 %v619_v27 }
  0x33   :  { %397 = vmatprep.subr.bf16.mxu0 %v624_v28 }
  0x36   :  { %398 = vmatpush1.bf16.msra.mxu0 %v622_v29 }
  0x37   :  { %399 = vmatprep.subr.bf16.mxu0 %v627_v40 }
  0x3a   :  { %400 = vmatpush1.bf16.msra.mxu0 %v625_v41 }
  0x3b   :  { %401 = vmatprep.subr.bf16.mxu0 %v630_v42 }
  0x3e   :  { %402 = vmatpush1.bf16.msra.mxu0 %v628_v43 }
  0xe1   :  { %v145_v31 = vpop.f32.mrf.mxu0 }
  0xe2   :  { %v146_v33 = vadd.f32 %v482_v30, %v145_v31 }
  0xe3   :  { %v562_v32 = vpop.f32.mrf.mxu0 }
  0xe4   :  { %v152_v37 = vmax.f32 %v146_v33, 0.0 }
  0xe5   :  { %v148_v34 = vpop.f32.mrf.mxu0 }
  0xe6   :  { %v149_v35 = vadd.f32 %v482_v30, %v148_v34 }
  0xe7   :  { %v563_v36 = vpop.f32.mrf.mxu0 }
  0xe8   :  { %v153_v38 = vmax.f32 %v149_v35, 0.0 }
  0xea   :  { %v154_v39 = vpack.c.bf16 %v153_v38, %v152_v37 }
  0xec   :  { %581 = vmatmul.mubr.bf16.vlgmr.msra.gmra.mxu1 %v154_v39 }
 0x1ac   :  { %v260_v46 = vpop.f32.mrf.mxu1 }
 0x1ad   :  { %v261_v48 = vadd.f32 %v492_v45, %v260_v46 }
 0x1ae   :  { %v582_v47 = vpop.f32.mrf.mxu1 }
 0x1af   :  { %v267_v52 = vmax.f32 %v261_v48, 0.0 }
 0x1b0   :  { %v263_v49 = vpop.f32.mrf.mxu1 }
 0x1b1   :  { %v264_v50 = vadd.f32 %v492_v45, %v263_v49 }
 0x1b2   :  { %v583_v51 = vpop.f32.mrf.mxu1 }
 0x1b3   :  { %v268_v53 = vmax.f32 %v264_v50, 0.0 }
 0x1b5   :  { %v269_v54 = vpack.c.bf16 %v268_v53, %v267_v52 }
 0x1b7   :  { %525 = vst [vmem:[#allocation2] sm:$0xff] %v269_v54   ;;  %420 = vmatmul.mubr.bf16.vlgmr.msra.gmra.mxu0 %v269_v54 }
 0x277   :  { %v421_v62 = vpop.f32.mrf.mxu0 }
 0x278   :  { %v422_v63 = vadd.f32 %v421_v62, %v300_v60 }
 0x279   :  { %v423_v0 = vpop.f32.mrf.mxu0 }
 0x27a   :  { %430 = vst [vmem:[%s859_s8] sm:$0xff] %v422_v63  ;;  %v424_v1 = vadd.f32 %v423_v0, %v304_v61  ;;  %434 = vmax.xlane.f32.xlu0 %v422_v63 }
 0x27b   :  { %v425_v2 = vpop.f32.mrf.mxu0 }
 0x27c   :  { %432 = vst [vmem:[%s860_s9] sm:$0xff] %v424_v1  ;;  %v426_v3 = vadd.f32 %v425_v2, %v300_v60 }
 0x27d   :  { %v427_v4 = vpop.f32.mrf.mxu0 }
 0x27e   :  { %431 = vst [vmem:[%s859_s8 + $0x8] sm:$0xff] %v426_v3  ;;  %v428_v5 = vadd.f32 %v427_v4, %v304_v61  ;;  %436 = vmax.xlane.f32.xlu0 %v426_v3  ;;  %s459_s8 = sshll.u32 %s664_s23, 4  ;;  %s460_s8 = int_to_ptr.vmem [resolvable:$true] %s459_s8 }
 0x27f   :  { %s639_s24 = scalar_lea.vmem %s460_s8, 128  ;;  %p644_p1 = scmp.lt.s32.totalorder %s460_s8, %s460_s8 }
 0x280   :  { %433 = vst [vmem:[%s860_s9 + $0x8] sm:$0xff] %v428_v5  ;;  %p640_p0 = scmp.ne.s32.totalorder %s460_s8, %s639_s24  ;;  %p645_p2 = scmp.lt.s32.totalorder %s639_s24, %s639_s24 }
 0x282   :  { %p646_p3 = por %p645_p2, %p644_p1 }
 0x284   :  { %p647_p4 = pnand %p646_p3, %p640_p0 }
 0x303   :  { %v435_v6 = vpop.xlane.xlu0 %434 }
 0x304   :  { %v438_v7 = vsub.f32 %v422_v63, %v435_v6 }
 0x306   :  { %v440_v8 = vmul.f32 1.442695, %v438_v7 }
 0x307   :  { %v437_v9 = vpop.xlane.xlu0 %436 }
 0x308   :  { %631 = vpow2.f32 %v440_v8  ;;  %v439_v10 = vsub.f32 %v426_v3, %v437_v9 }
 0x30a   :  { %v442_v11 = vmul.f32 1.442695, %v439_v10 }
 0x30c   :  { %633 = vpow2.f32 %v442_v11 }
 0x315   :  { %v632_v12 = vpop.eup %631 }
 0x316   :  { %444 = vadd.xlane.f32.xlu1 %v632_v12 }
 0x319   :  { %v634_v13 = vpop.eup %633 }
 0x31a   :  { %446 = vadd.xlane.f32.xlu1 %v634_v13 }
 0x31b   :  { %650 = shalt.err (!%p647_p4)
}
 0x31c   :  { %s665_s9 = smov 64   ;;  %s666_s1 = smov 4  }
 0x31d   :  { %465 = dma.vmem_to_hbm [thread:$0]  %s460_s8, 128, %s858_s7, [#allocation3], %s665_s9, %s665_s9, %s666_s1  }
 0x39f   :  { %v445_v14 = vpop.xlane.xlu1 %444 }
 0x3a0   :  { %635 = vrcp.f32 %v445_v14 }
 0x3a3   :  { %v447_v15 = vpop.xlane.xlu1 %446 }
 0x3a4   :  { %637 = vrcp.f32 %v447_v15 }
 0x3ad   :  { %v636_v16 = vpop.eup %635 }
 0x3ae   :  { %v450_v17 = vmul.f32 %v636_v16, %v632_v12 }
 0x3b0   :  { %452 = vst [vmem:[%s861_s10] sm:$0xff] %v450_v17 }
 0x3b1   :  { %v638_v18 = vpop.eup %637 }
 0x3b2   :  { %v451_v19 = vmul.f32 %v638_v18, %v634_v13 }
 0x3b4   :  { %453 = vst [vmem:[%s861_s10 + $0x8] sm:$0xff] %v451_v19 }
 0x3b5   :  { %659 = dma.done.wait [#allocation3], 128  }
 0x3b6   :  { %660 = vsyncadd [#allocation3], 4294967168 }
 0x3b7   :  { %481 = vsyncpa [#allocation3], 1 }

// kernel: roi_box_head_forward.1
= control target key start
LH: loop header
LB: loop body
LE: loop exit
PB: predicated region body
PF: predicated region fallthrough
CT: control target
= control target key end

     0   :  { %v661_v1 = vmov 0.0   ;;  %vm662_vm0 = vmmov 0   ;;  %s851_s0 = inlined_call_operand.vmem [shape: bf16[16,128], index: 0, kind: input, shape index: {}]   ;;  %s852_s1 = inlined_call_operand.vmem [shape: bf16[128,128], index: 1, kind: input, shape index: {}]   ;;  %s853_s2 = inlined_call_operand.vmem [shape: f32[1,128], index: 2, kind: input, shape index: {}]   ;;  %s854_s3 = inlined_call_operand.vmem [shape: bf16[128,128], index: 3, kind: input, shape index: {}]   ;;  %s855_s4 = inlined_call_operand.vmem [shape: f32[1,128], index: 4, kind: input, shape index: {}]   ;;  %s856_s5 = inlined_call_operand.vmem [shape: bf16[128,256], index: 5, kind: input, shape index: {}]   ;;  %s857_s6 = inlined_call_operand.vmem [shape: f32[1,256], index: 6, kind: input, shape index: {}]   ;;  %s858_s7 = inlined_call_operand.hbm [shape: bf16[16,128], index: 7, kind: output, shape index: {0}]   ;;  %s859_s8 = inlined_call_operand.vmem [shape: f32[16,128], index: 8, kind: output, shape index: {1}]   ;;  %s860_s9 = inlined_call_operand.vmem [shape: f32[16,128], index: 9, kind: output, shape index: {2}]   ;;  %s861_s10 = inlined_call_operand.vmem [shape: f32[16,128], index: 10, kind: output, shape index: {3}]  }
   0x1   :  { %v590_v0 = vld [vmem:[%s852_s1 + $0x38] sm:$0xff]   ;;  %544 = vmatprep.subr.bf16.mxu0 %v661_v1  ;;  %564 = vmatprep.subr.bf16.mxu1 %v661_v1  ;;  %v591_v2 = vld [vmem:[%s852_s1 + $0x30] sm:$0xff]   ;;  %v592_v3 = vld [vmem:[%s852_s1 + $0x28] sm:$0xff]  }
   0x2   :  { %545 = vmatpush3.bf16.msra.mxu0 %v590_v0  ;;  %560 = vmatprep.mubr.msk.bf16.mxu0 %vm662_vm0, %v661_v1  ;;  %v599_v4 = vld [vmem:[%s854_s3 + $0x38] sm:$0xff]   ;;  %v593_v5 = vld [vmem:[%s852_s1 + $0x20] sm:$0xff]   ;;  %v600_v6 = vld [vmem:[%s854_s3 + $0x30] sm:$0xff]  }
   0x3   :  { %546 = vmatprep.subr.bf16.mxu0 %v661_v1  ;;  %580 = vmatprep.mubr.msk.bf16.mxu1 %vm662_vm0, %v661_v1  ;;  %v594_v7 = vld [vmem:[%s852_s1 + $0x18] sm:$0xff]   ;;  %v601_v8 = vld [vmem:[%s854_s3 + $0x28] sm:$0xff]   ;;  %v595_v9 = vld [vmem:[%s852_s1 + $0x10] sm:$0xff]  }
   0x4   :  { %565 = vmatpush3.bf16.msra.mxu1 %v599_v4  ;;  %v602_v10 = vld [vmem:[%s854_s3 + $0x20] sm:$0xff]  }
   0x5   :  { %566 = vmatprep.subr.bf16.mxu1 %v661_v1 }
   0x6   :  { %547 = vmatpush3.bf16.msra.mxu0 %v591_v2 }
   0x7   :  { %548 = vmatprep.subr.bf16.mxu0 %v661_v1 }
   0x8   :  { %567 = vmatpush3.bf16.msra.mxu1 %v600_v6 }
   0x9   :  { %568 = vmatprep.subr.bf16.mxu1 %v661_v1 }
   0xa   :  { %549 = vmatpush3.bf16.msra.mxu0 %v592_v3 }
   0xb   :  { %550 = vmatprep.subr.bf16.mxu0 %v661_v1 }
   0xc   :  { %569 = vmatpush3.bf16.msra.mxu1 %v601_v8 }
   0xd   :  { %570 = vmatprep.subr.bf16.mxu1 %v661_v1 }
   0xe   :  { %551 = vmatpush3.bf16.msra.mxu0 %v593_v5 }
   0xf   :  { %552 = vmatprep.subr.bf16.mxu0 %v661_v1 }
  0x12   :  { %553 = vmatpush3.bf16.msra.mxu0 %v594_v7 }
  0x13   :  { %554 = vmatprep.subr.bf16.mxu0 %v661_v1 }
  0x14   :  { %16 = vsyncpa [#allocation3], 0  ;;  %v596_v11 = vld [vmem:[%s852_s1 + $0x8] sm:$0xff]   ;;  %571 = vmatpush3.bf16.msra.mxu1 %v602_v10  ;;  %v603_v12 = vld [vmem:[%s854_s3 + $0x18] sm:$0xff]   ;;  %v663_v44 = vmov 0   ;;  %v297_v55 = vlaneseq  ;;  %s664_s23 = smov [#allocation2]  }
  0x15   :  { %572 = vmatprep.subr.bf16.mxu1 %v661_v1  ;;  %v597_v13 = vld [vmem:[%s852_s1] sm:$0xff]   ;;  %v604_v15 = vld [vmem:[%s854_s3 + $0x10] sm:$0xff]   ;;  %v605_v16 = vld [vmem:[%s854_s3 + $0x8] sm:$0xff]  }
  0x16   :  { %555 = vmatpush3.bf16.msra.mxu0 %v595_v9  ;;  %v598_v14 = vld [vmem:[%s851_s0] sm:$0xff]   ;;  %v607_v18 = vld [vmem:[%s856_s5 + $0x70] ss:$8 sps:$4 sm:$0xff]   ;;  %v609_v19 = vld [vmem:[%s856_s5 + $0x74] ss:$8 sps:$4 sm:$0xff]   ;;  %v298_v56 = vshrl.u32 %v297_v55, 7 }
  0x17   :  { %556 = vmatprep.subr.bf16.mxu0 %v661_v1  ;;  %v606_v17 = vld [vmem:[%s854_s3] sm:$0xff]   ;;  %v615_v22 = vld [vmem:[%s856_s5 + $0x54] ss:$8 sps:$4 sm:$0xff]   ;;  %v613_v23 = vld [vmem:[%s856_s5 + $0x50] ss:$8 sps:$4 sm:$0xff]  }
  0x18   :  { %573 = vmatpush3.bf16.msra.mxu1 %v603_v12  ;;  %v612_v20 = vld [vmem:[%s856_s5 + $0x64] ss:$8 sps:$4 sm:$0xff]   ;;  %v610_v21 = vld [vmem:[%s856_s5 + $0x60] ss:$8 sps:$4 sm:$0xff]   ;;  %v621_v26 = vld [vmem:[%s856_s5 + $0x34] ss:$8 sps:$4 sm:$0xff]  }
  0x19   :  { %574 = vmatprep.subr.bf16.mxu1 %v661_v1  ;;  %v618_v24 = vld [vmem:[%s856_s5 + $0x44] ss:$8 sps:$4 sm:$0xff]   ;;  %v616_v25 = vld [vmem:[%s856_s5 + $0x40] ss:$8 sps:$4 sm:$0xff]   ;;  %v619_v27 = vld [vmem:[%s856_s5 + $0x30] ss:$8 sps:$4 sm:$0xff]  }
  0x1a   :  { %557 = vmatpush3.bf16.msra.mxu0 %v596_v11  ;;  %v624_v28 = vld [vmem:[%s856_s5 + $0x24] ss:$8 sps:$4 sm:$0xff]   ;;  %v622_v29 = vld [vmem:[%s856_s5 + $0x20] ss:$8 sps:$4 sm:$0xff]   ;;  %v627_v40 = vld [vmem:[%s856_s5 + $0x14] ss:$8 sps:$4 sm:$0xff]  }
  0x1b   :  { %558 = vmatprep.subr.bf16.mxu0 %v661_v1  ;;  %v482_v30 = vld [vmem:[%s853_s2] ss:$0 sm:$0xff]  ;;  %v625_v41 = vld [vmem:[%s856_s5 + $0x10] ss:$8 sps:$4 sm:$0xff]   ;;  %v630_v42 = vld [vmem:[%s856_s5 + $0x4] ss:$8 sps:$4 sm:$0xff]  }
  0x1c   :  { %575 = vmatpush3.bf16.msra.mxu1 %v604_v15  ;;  %v628_v43 = vld [vmem:[%s856_s5] ss:$8 sps:$4 sm:$0xff]   ;;  %v299_v57 = vsub.s32 0, %v298_v56  ;;  %v303_v59 = vsub.s32 1, %v298_v56 }
  0x1d   :  { %576 = vmatprep.subr.bf16.mxu1 %v661_v1  ;;  %v492_v45 = vld [vmem:[%s855_s4] ss:$0 sm:$0xff] }
  0x1e   :  { %559 = vmatpush3.bf16.msra.mxu0 %v597_v13  ;;  %v295_v58 = vld [vmem:[%s857_s6] sm:$0x3] }
  0x1f   :  { %387 = vmatprep.subr.bf16.mxu0 %v609_v19  ;;  %v300_v60 = vrot.slane %v295_v58, %v299_v57  ;;  %v304_v61 = vrot.slane %v295_v58, %v303_v59 }
  0x20   :  { %577 = vmatpush3.bf16.msra.mxu1 %v605_v16 }
  0x21   :  { %561 = vmatmul.mubr.bf16.vlgmr.msra.gmra.mxu0 %v598_v14  ;;  %578 = vmatprep.subr.bf16.mxu1 %v661_v1 }
  0x22   :  { %388 = vmatpush1.bf16.msra.mxu0 %v607_v18  ;;  %419 = vmatprep.mubr.bf16.mxu0 %v663_v44 }
  0x23   :  { %389 = vmatprep.subr.bf16.mxu0 %v612_v20 }
  0x24   :  { %579 = vmatpush3.bf16.msra.mxu1 %v606_v17 }
  0x26   :  { %390 = vmatpush1.bf16.msra.mxu0 %v610_v21 }
  0x27   :  { %391 = vmatprep.subr.bf16.mxu0 %v615_v22 }
  0x2a   :  { %392 = vmatpush1.bf16.msra.mxu0 %v613_v23 }
  0x2b   :  { %393 = vmatprep.subr.bf16.mxu0 %v618_v24 }
  0x2e   :  { %394 = vmatpush1.bf16.msra.mxu0 %v616_v25 }
  0x2f   :  { %395 = vmatprep.subr.bf16.mxu0 %v621_v26 }
  0x32   :  { %396 = vmatpush1.bf16.msra.mxu0 %v619_v27 }
  0x33   :  { %397 = vmatprep.subr.bf16.mxu0 %v624_v28 }
  0x36   :  { %398 = vmatpush1.bf16.msra.mxu0 %v622_v29 }
  0x37   :  { %399 = vmatprep.subr.bf16.mxu0 %v627_v40 }
  0x3a   :  { %400 = vmatpush1.bf16.msra.mxu0 %v625_v41 }
  0x3b   :  { %401 = vmatprep.subr.bf16.mxu0 %v630_v42 }
  0x3e   :  { %402 = vmatpush1.bf16.msra.mxu0 %v628_v43 }
  0xe1   :  { %v145_v31 = vpop.f32.mrf.mxu0 }
  0xe2   :  { %v146_v33 = vadd.f32 %v482_v30, %v145_v31 }
  0xe3   :  { %v562_v32 = vpop.f32.mrf.mxu0 }
  0xe4   :  { %v152_v37 = vmax.f32 %v146_v33, 0.0 }
  0xe5   :  { %v148_v34 = vpop.f32.mrf.mxu0 }
  0xe6   :  { %v149_v35 = vadd.f32 %v482_v30, %v148_v34 }
  0xe7   :  { %v563_v36 = vpop.f32.mrf.mxu0 }
  0xe8   :  { %v153_v38 = vmax.f32 %v149_v35, 0.0 }
  0xea   :  { %v154_v39 = vpack.c.bf16 %v153_v38, %v152_v37 }
  0xec   :  { %581 = vmatmul.mubr.bf16.vlgmr.msra.gmra.mxu1 %v154_v39 }
 0x1ac   :  { %v260_v46 = vpop.f32.mrf.mxu1 }
 0x1ad   :  { %v261_v48 = vadd.f32 %v492_v45, %v260_v46 }
 0x1ae   :  { %v582_v47 = vpop.f32.mrf.mxu1 }
 0x1af   :  { %v267_v52 = vmax.f32 %v261_v48, 0.0 }
 0x1b0   :  { %v263_v49 = vpop.f32.mrf.mxu1 }
 0x1b1   :  { %v264_v50 = vadd.f32 %v492_v45, %v263_v49 }
 0x1b2   :  { %v583_v51 = vpop.f32.mrf.mxu1 }
 0x1b3   :  { %v268_v53 = vmax.f32 %v264_v50, 0.0 }
 0x1b5   :  { %v269_v54 = vpack.c.bf16 %v268_v53, %v267_v52 }
 0x1b7   :  { %525 = vst [vmem:[#allocation2] sm:$0xff] %v269_v54   ;;  %420 = vmatmul.mubr.bf16.vlgmr.msra.gmra.mxu0 %v269_v54 }
 0x277   :  { %v421_v62 = vpop.f32.mrf.mxu0 }
 0x278   :  { %v422_v63 = vadd.f32 %v421_v62, %v300_v60 }
 0x279   :  { %v423_v0 = vpop.f32.mrf.mxu0 }
 0x27a   :  { %430 = vst [vmem:[%s859_s8] sm:$0xff] %v422_v63  ;;  %v424_v1 = vadd.f32 %v423_v0, %v304_v61  ;;  %434 = vmax.xlane.f32.xlu0 %v422_v63 }
 0x27b   :  { %v425_v2 = vpop.f32.mrf.mxu0 }
 0x27c   :  { %432 = vst [vmem:[%s860_s9] sm:$0xff] %v424_v1  ;;  %v426_v3 = vadd.f32 %v425_v2, %v300_v60 }
 0x27d   :  { %v427_v4 = vpop.f32.mrf.mxu0 }
 0x27e   :  { %431 = vst [vmem:[%s859_s8 + $0x8] sm:$0xff] %v426_v3  ;;  %v428_v5 = vadd.f32 %v427_v4, %v304_v61  ;;  %436 = vmax.xlane.f32.xlu0 %v426_v3  ;;  %s459_s8 = sshll.u32 %s664_s23, 4  ;;  %s460_s8 = int_to_ptr.vmem [resolvable:$true] %s459_s8 }
 0x27f   :  { %s639_s24 = scalar_lea.vmem %s460_s8, 128  ;;  %p644_p1 = scmp.lt.s32.totalorder %s460_s8, %s460_s8 }
 0x280   :  { %433 = vst [vmem:[%s860_s9 + $0x8] sm:$0xff] %v428_v5  ;;  %p640_p0 = scmp.ne.s32.totalorder %s460_s8, %s639_s24  ;;  %p645_p2 = scmp.lt.s32.totalorder %s639_s24, %s639_s24 }
 0x282   :  { %p646_p3 = por %p645_p2, %p644_p1 }
 0x284   :  { %p647_p4 = pnand %p646_p3, %p640_p0 }
 0x303   :  { %v435_v6 = vpop.xlane.xlu0 %434 }
 0x304   :  { %v438_v7 = vsub.f32 %v422_v63, %v435_v6 }
 0x306   :  { %v440_v8 = vmul.f32 1.442695, %v438_v7 }
 0x307   :  { %v437_v9 = vpop.xlane.xlu0 %436 }
 0x308   :  { %631 = vpow2.f32 %v440_v8  ;;  %v439_v10 = vsub.f32 %v426_v3, %v437_v9 }
 0x30a   :  { %v442_v11 = vmul.f32 1.442695, %v439_v10 }
 0x30c   :  { %633 = vpow2.f32 %v442_v11 }
 0x315   :  { %v632_v12 = vpop.eup %631 }
 0x316   :  { %444 = vadd.xlane.f32.xlu1 %v632_v12 }
 0x319   :  { %v634_v13 = vpop.eup %633 }
 0x31a   :  { %446 = vadd.xlane.f32.xlu1 %v634_v13 }
 0x31b   :  { %650 = shalt.err (!%p647_p4)
}
 0x31c   :  { %s665_s9 = smov 64   ;;  %s666_s1 = smov 4  }
 0x31d   :  { %465 = dma.vmem_to_hbm [thread:$0]  %s460_s8, 128, %s858_s7, [#allocation3], %s665_s9, %s665_s9, %s666_s1  }
 0x39f   :  { %v445_v14 = vpop.xlane.xlu1 %444 }
 0x3a0   :  { %635 = vrcp.f32 %v445_v14 }
 0x3a3   :  { %v447_v15 = vpop.xlane.xlu1 %446 }
 0x3a4   :  { %637 = vrcp.f32 %v447_v15 }
 0x3ad   :  { %v636_v16 = vpop.eup %635 }
 0x3ae   :  { %v450_v17 = vmul.f32 %v636_v16, %v632_v12 }
 0x3b0   :  { %452 = vst [vmem:[%s861_s10] sm:$0xff] %v450_v17 }
 0x3b1   :  { %v638_v18 = vpop.eup %637 }
 0x3b2   :  { %v451_v19 = vmul.f32 %v638_v18, %v634_v13 }
 0x3b4   :  { %453 = vst [vmem:[%s861_s10 + $0x8] sm:$0xff] %v451_v19 }
 0x3b5   :  { %659 = dma.done.wait [#allocation3], 128  }
 0x3b6   :  { %660 = vsyncadd [#allocation3], 4294967168 }
 0x3b7   :  { %481 = vsyncpa [#allocation3], 1 }

</bundles_post_ra>
